<compile_context>
chip_gen: v5e
topology: v5e:2x2
jax: 0.10.0
libtpu: 0.0.40
codegen_flags: <defaults>
</compile_context>

<pallas_src>
import functools
import math

import jax
import jax.numpy as jnp
from jax.experimental import pallas as pl
from jax.experimental.pallas import tpu as pltpu

HIDDEN = 128
HEAD_W = 128  # lane-dense fused-head width (policy lanes + 1 value lane + zero pad)
NEG_INF = -1e30


def _round_up(n, m):
    return (n + m - 1) // m * m


def _policy_value_kernel(x_ref, w1_ref, b1_ref, w2_ref, b2_ref,
                         wh_ref, bh_ref, addm_ref, pmask_ref, vmask_ref,
                         out_ref):
    # fc1 + ReLU  (bf16 MXU inputs, f32 accumulate, f32 elementwise)
    h1 = jnp.dot(x_ref[...], w1_ref[...], preferred_element_type=jnp.float32)
    h1 = jnp.maximum(h1 + b1_ref[...], 0.0)

    # fc2 + ReLU
    h2 = jnp.dot(h1.astype(jnp.bfloat16), w2_ref[...],
                 preferred_element_type=jnp.float32)
    h2 = jnp.maximum(h2 + b2_ref[...], 0.0)

    # fused heads: lanes [0:action_dim] = policy logits, lane action_dim = value logit
    logits = jnp.dot(h2.astype(jnp.bfloat16), wh_ref[...],
                     preferred_element_type=jnp.float32) + bh_ref[...]

    # log-softmax over policy lanes only; non-policy lanes get -1e30 added so
    # exp() underflows to exactly 0 (no select needed).
    masked = logits + addm_ref[...]
    m = jnp.max(masked, axis=-1, keepdims=True)
    shifted = masked - m
    expv = jnp.exp(shifted)
    lse = jnp.log(jnp.sum(expv, axis=-1, keepdims=True))
    log_policy = shifted - lse

    # value head: tanh (only lane action_dim survives the vmask)
    value = jnp.tanh(logits)

    out_ref[...] = (log_policy * pmask_ref[...]
                    + value * vmask_ref[...]).astype(out_ref.dtype)


def prepare_params(params):
    """One-time parameter preprocessing (hoisted out of the per-call forward path).

    params: dict with w1 (state_dim,128), b1 (1,128), w2 (128,128), b2 (1,128),
            wp (128,action_dim), bp (1,action_dim), wv (128,1), bv (1,1)
            (linear weights stored as (in_features, out_features)).
    Returns a dict of kernel-ready arrays plus the static action_dim.
    """
    action_dim = int(params["wp"].shape[1])
    assert action_dim + 1 <= HEAD_W, "fused head width exceeded"

    # fuse the two heads into one lane-dense (HIDDEN, HEAD_W) weight / bias
    wh = jnp.zeros((HIDDEN, HEAD_W), jnp.float32)
    wh = wh.at[:, :action_dim].set(params["wp"])
    wh = wh.at[:, action_dim:action_dim + 1].set(params["wv"])
    bh = jnp.zeros((1, HEAD_W), jnp.float32)
    bh = bh.at[:, :action_dim].set(params["bp"])
    bh = bh.at[:, action_dim:action_dim + 1].set(params["bv"])

    # resident constant mask rows (replace in-kernel iota/compare/select chains)
    lane = jnp.arange(HEAD_W)
    is_policy = (lane < action_dim)
    is_value = (lane == action_dim)
    add_mask = jnp.where(is_policy, 0.0, NEG_INF).astype(jnp.float32)[None, :]
    pmask = is_policy.astype(jnp.float32)[None, :]
    vmask = is_value.astype(jnp.float32)[None, :]

    prepped = {
        "w1": params["w1"].astype(jnp.bfloat16),
        "b1": params["b1"].astype(jnp.float32),
        "w2": params["w2"].astype(jnp.bfloat16),
        "b2": params["b2"].astype(jnp.float32),
        "wh": wh.astype(jnp.bfloat16),
        "bh": bh.astype(jnp.float32),
        "add_mask": add_mask,
        "pmask": pmask,
        "vmask": vmask,
        "action_dim": action_dim,
    }
    return prepped


@functools.partial(jax.jit, static_argnames=("action_dim", "out_dtype"))
def _forward_impl(x, w1, b1, w2, b2, wh, bh, add_mask, pmask, vmask,
                  *, action_dim, out_dtype):
    B, state_dim = x.shape

    # --- batch tiling -------------------------------------------------------
    # round to 16 (bf16 sublane packing); cap at 1024 (well under the v5e 16 MiB
    # default scoped-VMEM limit; per-step VMEM at TB=1024 is only a few MiB).
    MIN_TILE = 16
    B_min = _round_up(max(B, 1), MIN_TILE)
    if B_min >= 2 * MIN_TILE:
        # v7x: keep the parallel grid length >= 2 so both TensorCores get work.
        tb_cap = _round_up(B_min // 2, MIN_TILE)
    else:
        tb_cap = B_min
    TB = max(MIN_TILE, min(1024, tb_cap))
    B_pad = _round_up(B, TB)

    x_bf = x.astype(jnp.bfloat16)
    if B_pad != B:
        x_bf = jnp.pad(x_bf, ((0, B_pad - B), (0, 0)))

    grid = (pl.cdiv(B_pad, TB),)

    def _resident(shape):
        # full-array block, constant index map -> resident in VMEM across steps
        return pl.BlockSpec(shape, lambda i: (0, 0))

    out_bytes = jnp.dtype(out_dtype).itemsize
    cost = pl.CostEstimate(
        flops=2 * B_pad * HIDDEN * (state_dim + HIDDEN + HEAD_W),
        transcendentals=2 * B_pad * HEAD_W,            # exp + tanh
        bytes_accessed=(B_pad * state_dim * 2          # bf16 x read
                        + B_pad * HEAD_W * out_bytes   # output slab write
                        + (state_dim + HIDDEN) * HIDDEN * 2
                        + HIDDEN * HEAD_W * 2),        # resident weights
    )

    out = pl.pallas_call(
        _policy_value_kernel,
        out_shape=jax.ShapeDtypeStruct((B_pad, HEAD_W), out_dtype),
        grid=grid,
        in_specs=[
            pl.BlockSpec((TB, state_dim), lambda i: (i, 0)),   # x: tiled on batch
            _resident((state_dim, HIDDEN)),                    # w1
            _resident((1, HIDDEN)),                            # b1
            _resident((HIDDEN, HIDDEN)),                       # w2
            _resident((1, HIDDEN)),                            # b2
            _resident((HIDDEN, HEAD_W)),                       # fused head weight
            _resident((1, HEAD_W)),                            # fused head bias
            _resident((1, HEAD_W)),                            # additive softmax mask
            _resident((1, HEAD_W)),                            # policy lane selector
            _resident((1, HEAD_W)),                            # value lane selector
        ],
        out_specs=pl.BlockSpec((TB, HEAD_W), lambda i: (i, 0)),
        compiler_params=pltpu.CompilerParams(
            dimension_semantics=("parallel",)),
        cost_estimate=cost,
    )(x_bf, w1, b1, w2, b2, wh, bh, add_mask, pmask, vmask)

    out = out.astype(jnp.float32)
    policy = out[:B, :action_dim]
    value = out[:B, action_dim:action_dim + 1]
    return policy, value


def policy_value_forward(x, prepped, out_dtype=jnp.float32):
    """PolicyValueMCTS forward pass (single lane-dense Pallas TPU kernel).

    x: (B, state_dim) float32
    prepped: output of prepare_params()
    out_dtype: dtype of the kernel output slab (jnp.bfloat16 halves writeback
               HBM traffic at a small log-prob precision cost).
    returns: (policy (B, action_dim) f32 log-probs, value (B, 1) f32 in (-1, 1))
    """
    return _forward_impl(
        x, prepped["w1"], prepped["b1"], prepped["w2"], prepped["b2"],
        prepped["wh"], prepped["bh"], prepped["add_mask"], prepped["pmask"],
        prepped["vmask"], action_dim=prepped["action_dim"], out_dtype=out_dtype)


def _xavier_uniform(key, fan_in, fan_out):
    # Matches torch.nn.init.xavier_uniform_ (gain=1): U(-a, a), a = sqrt(6/(fan_in+fan_out)).
    bound = math.sqrt(6.0 / (fan_in + fan_out))
    # Stored as (in_features, out_features) — transpose of PyTorch's layout.
    return jax.random.uniform(key, (fan_in, fan_out), dtype=jnp.float32,
                              minval=-bound, maxval=bound)


def init_params(key, state_dim, action_dim):
    k1, k2, k3, k4 = jax.random.split(key, 4)
    return {
        "w1": _xavier_uniform(k1, state_dim, HIDDEN),
        "b1": jnp.zeros((1, HIDDEN), jnp.float32),
        "w2": _xavier_uniform(k2, HIDDEN, HIDDEN),
        "b2": jnp.zeros((1, HIDDEN), jnp.float32),
        "wp": _xavier_uniform(k3, HIDDEN, action_dim),
        "bp": jnp.zeros((1, action_dim), jnp.float32),
        "wv": _xavier_uniform(k4, HIDDEN, 1),
        "bv": jnp.zeros((1, 1), jnp.float32),
    }


def _reference_forward(x, params):
    # Pure-JAX reference matching the kernel's numerics (bf16 MXU inputs, f32 math).
    def c(a):
        return a.astype(jnp.bfloat16).astype(jnp.float32)

    h1 = jax.nn.relu(c(x) @ c(params["w1"]) + params["b1"])
    h2 = jax.nn.relu(c(h1) @ c(params["w2"]) + params["b2"])
    policy = jax.nn.log_softmax(c(h2) @ c(params["wp"]) + params["bp"], axis=-1)
    value = jnp.tanh(c(h2) @ c(params["wv"]) + params["bv"])
    return policy, value


if __name__ == "__main__":
    key = jax.random.PRNGKey(0)
    k_params, k_x = jax.random.split(key)

    batch = 8
    state_dim = 16   # e.g. one-hot frozen-lake state
    action_dim = 4   # up/down/left/right

    params = init_params(k_params, state_dim, action_dim)
    prepped = prepare_params(params)   # one-time: head fusion, casts, mask rows
    x = jax.random.normal(k_x, (batch, state_dim), dtype=jnp.float32)

    policy, value = policy_value_forward(x, prepped)
    policy = jax.block_until_ready(policy)
    value = jax.block_until_ready(value)

    # sanity check against a pure-JAX reference with matching precision
    policy_ref, value_ref = _reference_forward(x, params)
    assert policy.shape == (batch, action_dim) and value.shape == (batch, 1)
    assert jnp.allclose(policy, policy_ref, atol=1e-2, rtol=1e-2)
    assert jnp.allclose(value, value_ref, atol=1e-2, rtol=1e-2)
    # log-softmax rows must normalize
    assert jnp.allclose(jnp.sum(jnp.exp(policy), axis=-1), 1.0, atol=1e-3)

    # also exercise a larger batch so the multi-step parallel grid path is used
    x_big = jax.random.normal(k_x, (300, state_dim), dtype=jnp.float32)
    p_big, v_big = policy_value_forward(x_big, prepped)
    p_big = jax.block_until_ready(p_big)
    p_big_ref, v_big_ref = _reference_forward(x_big, params)
    assert jnp.allclose(p_big, p_big_ref, atol=1e-2, rtol=1e-2)
    assert jnp.allclose(v_big, v_big_ref, atol=1e-2, rtol=1e-2)

    print("KERNEL_OK")
</pallas_src>

<mosaic_0001>
module attributes {stable_mosaic.version = 11 : i64} {
  func.func @_policy_value_kernel(%arg0: i32, %arg1: memref<16x16xbf16, #tpu.memory_space<vmem>>, %arg2: memref<16x128xbf16, #tpu.memory_space<vmem>>, %arg3: memref<1x128xf32, #tpu.memory_space<vmem>>, %arg4: memref<128x128xbf16, #tpu.memory_space<vmem>>, %arg5: memref<1x128xf32, #tpu.memory_space<vmem>>, %arg6: memref<128x128xbf16, #tpu.memory_space<vmem>>, %arg7: memref<1x128xf32, #tpu.memory_space<vmem>>, %arg8: memref<1x128xf32, #tpu.memory_space<vmem>>, %arg9: memref<1x128xf32, #tpu.memory_space<vmem>>, %arg10: memref<1x128xf32, #tpu.memory_space<vmem>>, %arg11: memref<16x128xf32, #tpu.memory_space<vmem>>) attributes {dimension_semantics = [#tpu.dimension_semantics<parallel>], iteration_bounds = array<i64: 1>, scalar_prefetch = 0 : i64, scratch_operands = 0 : i64, tpu.core_type = #tpu.core_type<tc>, window_params = [{transform_indices = @transform_0, window_bounds = array<i64: 16, 16>}, {pipeline_mode = #tpu.pipeline_mode<synchronous>, transform_indices = @transform_1, window_bounds = array<i64: 16, 128>}, {pipeline_mode = #tpu.pipeline_mode<synchronous>, transform_indices = @transform_2, window_bounds = array<i64: 1, 128>}, {pipeline_mode = #tpu.pipeline_mode<synchronous>, transform_indices = @transform_3, window_bounds = array<i64: 128, 128>}, {pipeline_mode = #tpu.pipeline_mode<synchronous>, transform_indices = @transform_4, window_bounds = array<i64: 1, 128>}, {pipeline_mode = #tpu.pipeline_mode<synchronous>, transform_indices = @transform_5, window_bounds = array<i64: 128, 128>}, {pipeline_mode = #tpu.pipeline_mode<synchronous>, transform_indices = @transform_6, window_bounds = array<i64: 1, 128>}, {pipeline_mode = #tpu.pipeline_mode<synchronous>, transform_indices = @transform_7, window_bounds = array<i64: 1, 128>}, {pipeline_mode = #tpu.pipeline_mode<synchronous>, transform_indices = @transform_8, window_bounds = array<i64: 1, 128>}, {pipeline_mode = #tpu.pipeline_mode<synchronous>, transform_indices = @transform_9, window_bounds = array<i64: 1, 128>}, {transform_indices = @transform_10, window_bounds = array<i64: 16, 128>}]} {
    %c0 = arith.constant 0 : index
    %c0_0 = arith.constant 0 : index
    %0 = vector.load %arg1[%c0, %c0_0] : memref<16x16xbf16, #tpu.memory_space<vmem>>, vector<16x16xbf16>
    %c0_1 = arith.constant 0 : index
    %c0_2 = arith.constant 0 : index
    %1 = vector.load %arg2[%c0_1, %c0_2] : memref<16x128xbf16, #tpu.memory_space<vmem>>, vector<16x128xbf16>
    %cst = arith.constant dense<0.000000e+00> : vector<16x128xf32>
    %2 = tpu.matmul %0, %1, %cst {dimension_numbers = #tpu.dot_dimension_numbers<[1], [0], [0], [1], [0, 0, 1, 1], [], []>} : vector<16x16xbf16>, vector<16x128xbf16>, vector<16x128xf32> -> vector<16x128xf32>
    %c0_3 = arith.constant 0 : index
    %c0_4 = arith.constant 0 : index
    %3 = vector.load %arg3[%c0_3, %c0_4] : memref<1x128xf32, #tpu.memory_space<vmem>>, vector<1x128xf32>
    %4 = vector.broadcast %3 : vector<1x128xf32> to vector<16x128xf32>
    %5 = arith.addf %2, %4 : vector<16x128xf32>
    %cst_5 = arith.constant 0.000000e+00 : f32
    %6 = vector.broadcast %cst_5 : f32 to vector<16x128xf32>
    %7 = arith.maximumf %5, %6 : vector<16x128xf32>
    %8 = arith.truncf %7 : vector<16x128xf32> to vector<16x128xbf16>
    %c0_6 = arith.constant 0 : index
    %c0_7 = arith.constant 0 : index
    %9 = vector.load %arg4[%c0_6, %c0_7] : memref<128x128xbf16, #tpu.memory_space<vmem>>, vector<128x128xbf16>
    %cst_8 = arith.constant dense<0.000000e+00> : vector<16x128xf32>
    %10 = tpu.matmul %8, %9, %cst_8 {dimension_numbers = #tpu.dot_dimension_numbers<[1], [0], [0], [1], [0, 0, 1, 1], [], []>} : vector<16x128xbf16>, vector<128x128xbf16>, vector<16x128xf32> -> vector<16x128xf32>
    %c0_9 = arith.constant 0 : index
    %c0_10 = arith.constant 0 : index
    %11 = vector.load %arg5[%c0_9, %c0_10] : memref<1x128xf32, #tpu.memory_space<vmem>>, vector<1x128xf32>
    %12 = vector.broadcast %11 : vector<1x128xf32> to vector<16x128xf32>
    %13 = arith.addf %10, %12 : vector<16x128xf32>
    %cst_11 = arith.constant 0.000000e+00 : f32
    %14 = vector.broadcast %cst_11 : f32 to vector<16x128xf32>
    %15 = arith.maximumf %13, %14 : vector<16x128xf32>
    %16 = arith.truncf %15 : vector<16x128xf32> to vector<16x128xbf16>
    %c0_12 = arith.constant 0 : index
    %c0_13 = arith.constant 0 : index
    %17 = vector.load %arg6[%c0_12, %c0_13] : memref<128x128xbf16, #tpu.memory_space<vmem>>, vector<128x128xbf16>
    %cst_14 = arith.constant dense<0.000000e+00> : vector<16x128xf32>
    %18 = tpu.matmul %16, %17, %cst_14 {dimension_numbers = #tpu.dot_dimension_numbers<[1], [0], [0], [1], [0, 0, 1, 1], [], []>} : vector<16x128xbf16>, vector<128x128xbf16>, vector<16x128xf32> -> vector<16x128xf32>
    %c0_15 = arith.constant 0 : index
    %c0_16 = arith.constant 0 : index
    %19 = vector.load %arg7[%c0_15, %c0_16] : memref<1x128xf32, #tpu.memory_space<vmem>>, vector<1x128xf32>
    %20 = vector.broadcast %19 : vector<1x128xf32> to vector<16x128xf32>
    %21 = arith.addf %18, %20 : vector<16x128xf32>
    %c0_17 = arith.constant 0 : index
    %c0_18 = arith.constant 0 : index
    %22 = vector.load %arg8[%c0_17, %c0_18] : memref<1x128xf32, #tpu.memory_space<vmem>>, vector<1x128xf32>
    %23 = vector.broadcast %22 : vector<1x128xf32> to vector<16x128xf32>
    %24 = arith.addf %21, %23 : vector<16x128xf32>
    %cst_19 = arith.constant dense<0xFF800000> : vector<16xf32>
    %25 = vector.multi_reduction <maximumf>, %24, %cst_19 [1] : vector<16x128xf32> to vector<16xf32>
    %26 = vector.shape_cast %25 : vector<16xf32> to vector<16x1xf32>
    %27 = vector.broadcast %26 : vector<16x1xf32> to vector<16x128xf32>
    %28 = arith.subf %24, %27 : vector<16x128xf32>
    %29 = math.exp %28 : vector<16x128xf32>
    %cst_20 = arith.constant dense<0.000000e+00> : vector<16xf32>
    %30 = vector.multi_reduction <add>, %29, %cst_20 [1] : vector<16x128xf32> to vector<16xf32>
    %31 = vector.shape_cast %30 : vector<16xf32> to vector<16x1xf32>
    %32 = math.log %31 : vector<16x1xf32>
    %33 = vector.broadcast %32 : vector<16x1xf32> to vector<16x128xf32>
    %34 = arith.subf %28, %33 : vector<16x128xf32>
    %35 = math.tanh %21 : vector<16x128xf32>
    %c0_21 = arith.constant 0 : index
    %c0_22 = arith.constant 0 : index
    %36 = vector.load %arg9[%c0_21, %c0_22] : memref<1x128xf32, #tpu.memory_space<vmem>>, vector<1x128xf32>
    %37 = vector.broadcast %36 : vector<1x128xf32> to vector<16x128xf32>
    %38 = arith.mulf %34, %37 : vector<16x128xf32>
    %c0_23 = arith.constant 0 : index
    %c0_24 = arith.constant 0 : index
    %39 = vector.load %arg10[%c0_23, %c0_24] : memref<1x128xf32, #tpu.memory_space<vmem>>, vector<1x128xf32>
    %40 = vector.broadcast %39 : vector<1x128xf32> to vector<16x128xf32>
    %41 = arith.mulf %35, %40 : vector<16x128xf32>
    %42 = arith.addf %38, %41 : vector<16x128xf32>
    %c0_25 = arith.constant 0 : index
    %c0_26 = arith.constant 0 : index
    %43 = vector.load %arg11[%c0_25, %c0_26] : memref<16x128xf32, #tpu.memory_space<vmem>>, vector<16x128xf32>
    tpu.vector_store %arg11[%c0_25, %c0_26], %42 {strides = array<i32>} : memref<16x128xf32, #tpu.memory_space<vmem>>, vector<16x128xf32>,
    return
  }
  func.func @transform_0(%arg0: i32) -> (i32, i32) {
    %c0_i32 = arith.constant 0 : i32
    %c0_i32_0 = arith.constant 0 : i32
    return %arg0, %c0_i32 : i32, i32
  }
  func.func @transform_1(%arg0: i32) -> (i32, i32) {
    %c0_i32 = arith.constant 0 : i32
    %c0_i32_0 = arith.constant 0 : i32
    %c0_i32_1 = arith.constant 0 : i32
    return %c0_i32, %c0_i32_0 : i32, i32
  }
  func.func @transform_2(%arg0: i32) -> (i32, i32) {
    %c0_i32 = arith.constant 0 : i32
    %c0_i32_0 = arith.constant 0 : i32
    %c0_i32_1 = arith.constant 0 : i32
    return %c0_i32, %c0_i32_0 : i32, i32
  }
  func.func @transform_3(%arg0: i32) -> (i32, i32) {
    %c0_i32 = arith.constant 0 : i32
    %c0_i32_0 = arith.constant 0 : i32
    %c0_i32_1 = arith.constant 0 : i32
    return %c0_i32, %c0_i32_0 : i32, i32
  }
  func.func @transform_4(%arg0: i32) -> (i32, i32) {
    %c0_i32 = arith.constant 0 : i32
    %c0_i32_0 = arith.constant 0 : i32
    %c0_i32_1 = arith.constant 0 : i32
    return %c0_i32, %c0_i32_0 : i32, i32
  }
  func.func @transform_5(%arg0: i32) -> (i32, i32) {
    %c0_i32 = arith.constant 0 : i32
    %c0_i32_0 = arith.constant 0 : i32
    %c0_i32_1 = arith.constant 0 : i32
    return %c0_i32, %c0_i32_0 : i32, i32
  }
  func.func @transform_6(%arg0: i32) -> (i32, i32) {
    %c0_i32 = arith.constant 0 : i32
    %c0_i32_0 = arith.constant 0 : i32
    %c0_i32_1 = arith.constant 0 : i32
    return %c0_i32, %c0_i32_0 : i32, i32
  }
  func.func @transform_7(%arg0: i32) -> (i32, i32) {
    %c0_i32 = arith.constant 0 : i32
    %c0_i32_0 = arith.constant 0 : i32
    %c0_i32_1 = arith.constant 0 : i32
    return %c0_i32, %c0_i32_0 : i32, i32
  }
  func.func @transform_8(%arg0: i32) -> (i32, i32) {
    %c0_i32 = arith.constant 0 : i32
    %c0_i32_0 = arith.constant 0 : i32
    %c0_i32_1 = arith.constant 0 : i32
    return %c0_i32, %c0_i32_0 : i32, i32
  }
  func.func @transform_9(%arg0: i32) -> (i32, i32) {
    %c0_i32 = arith.constant 0 : i32
    %c0_i32_0 = arith.constant 0 : i32
    %c0_i32_1 = arith.constant 0 : i32
    return %c0_i32, %c0_i32_0 : i32, i32
  }
  func.func @transform_10(%arg0: i32) -> (i32, i32) {
    %c0_i32 = arith.constant 0 : i32
    %c0_i32_0 = arith.constant 0 : i32
    return %arg0, %c0_i32 : i32, i32
  }
}

</mosaic_0001>

<bundles_post_ra>
// kernel: _forward_impl.1
= control target key start
LH: loop header
LB: loop body
LE: loop exit
PB: predicated region body
PF: predicated region fallthrough
CT: control target
= control target key end

     0   :  { %15 = vsyncpa [#allocation3], 0  ;;  %s585_s0 = inlined_call_operand.vmem [shape: bf16[16,16], index: 0, kind: input, shape index: {}]   ;;  %s586_s1 = inlined_call_operand.vmem [shape: bf16[16,128], index: 1, kind: input, shape index: {}]   ;;  %s587_s2 = inlined_call_operand.vmem [shape: f32[1,128], index: 2, kind: input, shape index: {}]   ;;  %s588_s3 = inlined_call_operand.hbm [shape: bf16[128,128], index: 3, kind: input, shape index: {}]   ;;  %s589_s4 = inlined_call_operand.vmem [shape: f32[1,128], index: 4, kind: input, shape index: {}]   ;;  %s590_s5 = inlined_call_operand.hbm [shape: bf16[128,128], index: 5, kind: input, shape index: {}]   ;;  %s591_s6 = inlined_call_operand.vmem [shape: f32[1,128], index: 6, kind: input, shape index: {}]   ;;  %s592_s7 = inlined_call_operand.vmem [shape: f32[1,128], index: 7, kind: input, shape index: {}]   ;;  %s593_s8 = inlined_call_operand.vmem [shape: f32[1,128], index: 8, kind: input, shape index: {}]   ;;  %s594_s9 = inlined_call_operand.vmem [shape: f32[1,128], index: 9, kind: input, shape index: {}]   ;;  %s595_s10 = inlined_call_operand.vmem [shape: f32[16,128], index: 10, kind: output, shape index: {}]  }
   0x1   :  { %s27_s15 = sshll.u32 %s588_s3, 4  ;;  %s28_s15 = int_to_ptr.hbm [resolvable:$true] %s27_s15 }
   0x2   :  { %16 = vsyncpa [#allocation5], 0  ;;  %s490_s16 = smov [#allocation2]   ;;  %s42_s20 = sshll.u32 %s590_s5, 4  ;;  %s43_s20 = int_to_ptr.hbm [resolvable:$true] %s42_s20 }
   0x3   :  { %s29_s17 = sshll.u32 %s490_s16, 4  ;;  %s491_s21 = smov 64   ;;  %s30_s17 = int_to_ptr.vmem [resolvable:$true] %s29_s17 }
   0x4   :  { %s492_s22 = smov 4   ;;  %s493_s23 = smov [#allocation4]  }
   0x5   :  { %35 = dma.hbm_to_vmem [thread:$0]  %s28_s15, 1024, %s30_s17, [#allocation3], %s491_s21, %s491_s21, %s492_s22  }
   0x6   :  { %s44_s24 = sshll.u32 %s493_s23, 4  ;;  %s45_s24 = int_to_ptr.vmem [resolvable:$true] %s44_s24 }
   0x7   :  { %50 = dma.hbm_to_vmem [thread:$0]  %s43_s20, 1024, %s45_s24, [#allocation5], %s491_s21, %s491_s21, %s492_s22  }
   0x8   :  { %486 = dma.done.wait [#allocation3], 1024  }
   0x9   :  { %487 = vsyncadd [#allocation3], 4294966272 }
   0xa   :  { %488 = dma.done.wait [#allocation5], 1024  }
   0xb   :  { %489 = vsyncadd [#allocation5], 4294966272  ;;  %v399_v0 = vld [vmem:[%s586_s1] sm:$0xff]  ;;  %v407_v1 = vld [vmem:[#allocation2 + $0x38] sm:$0xff]  ;;  %vm87_vm0 = vcmask 130048  }
   0xc   :  { %v398_v2 = vld [vmem:[%s585_s0] sm:$0xff]  ;;  %98 = vmatpush.bf16.msra.mxu0 %v399_v0  ;;  %176 = vmatpush.bf16.msra.mxu1 %v407_v1  ;;  %v406_v3 = vld [vmem:[#allocation2 + $0x30] sm:$0xff]  ;;  %v405_v4 = vld [vmem:[#allocation2 + $0x28] sm:$0xff] }
   0xd   :  { %v404_v5 = vld [vmem:[#allocation2 + $0x20] sm:$0xff]  ;;  %v403_v6 = vld [vmem:[#allocation2 + $0x18] sm:$0xff]  ;;  %v402_v7 = vld [vmem:[#allocation2 + $0x10] sm:$0xff] }
   0xe   :  { %v401_v8 = vld [vmem:[#allocation2 + $0x8] sm:$0xff]  ;;  %v400_v9 = vld [vmem:[#allocation2] sm:$0xff]  ;;  %v415_v10 = vld [vmem:[#allocation4 + $0x38] sm:$0xff] }
   0xf   :  { %333 = vmatmul.msk.bf16.vlgmr.msra.gmra.mxu0 %vm87_vm0, %v398_v2  ;;  %261 = vmatpush.bf16.msra.mxu2 %v415_v10  ;;  %v414_v11 = vld [vmem:[#allocation4 + $0x30] sm:$0xff]  ;;  %v413_v12 = vld [vmem:[#allocation4 + $0x28] sm:$0xff]  ;;  %v412_v13 = vld [vmem:[#allocation4 + $0x20] sm:$0xff] }
  0x10   :  { %177 = vmatpush.bf16.msra.mxu1 %v406_v3  ;;  %v420_v15 = vld [vmem:[%s587_s2] ss:$0 sm:$0xff]  ;;  %v411_v22 = vld [vmem:[#allocation4 + $0x18] sm:$0xff]  ;;  %v410_v23 = vld [vmem:[#allocation4 + $0x10] sm:$0xff] }
  0x11   :  { %v409_v24 = vld [vmem:[#allocation4 + $0x8] sm:$0xff]  ;;  %v408_v25 = vld [vmem:[#allocation4] sm:$0xff] }
  0x12   :  { %v421_v27 = vld [vmem:[%s589_s4] ss:$0 sm:$0xff] }
  0x13   :  { %262 = vmatpush.bf16.msra.mxu2 %v414_v11  ;;  %v422_v34 = vld [vmem:[%s591_s6] ss:$0 sm:$0xff] }
  0x14   :  { %178 = vmatpush.bf16.msra.mxu1 %v405_v4  ;;  %v424_v35 = vld [vmem:[%s592_s7] ss:$0 sm:$0xff] }
  0x15   :  { %v423_v52 = vld [vmem:[%s594_s9] ss:$0 sm:$0xff] }
  0x16   :  { %v425_v53 = vld [vmem:[%s593_s8] ss:$0 sm:$0xff] }
  0x17   :  { %263 = vmatpush.bf16.msra.mxu2 %v413_v12 }
  0x18   :  { %179 = vmatpush.bf16.msra.mxu1 %v404_v5 }
  0x1b   :  { %264 = vmatpush.bf16.msra.mxu2 %v412_v13 }
  0x1c   :  { %180 = vmatpush.bf16.msra.mxu1 %v403_v6 }
  0x1f   :  { %265 = vmatpush.bf16.msra.mxu2 %v411_v22 }
  0x20   :  { %181 = vmatpush.bf16.msra.mxu1 %v402_v7 }
  0x23   :  { %266 = vmatpush.bf16.msra.mxu2 %v410_v23 }
  0x24   :  { %182 = vmatpush.bf16.msra.mxu1 %v401_v8 }
  0x27   :  { %267 = vmatpush.bf16.msra.mxu2 %v409_v24 }
  0x28   :  { %183 = vmatpush.bf16.msra.mxu1 %v400_v9 }
  0x2b   :  { %268 = vmatpush.bf16.msra.mxu2 %v408_v25 }
  0x8c   :  { %v100_v14 = vpop.f32.mrf.mxu0 }
  0x8d   :  { %v101_v16 = vadd.f32 %v420_v15, %v100_v14 }
  0x8f   :  { %v105_v19 = vmax.f32 %v101_v16, 0.0 }
  0x94   :  { %v102_v17 = vpop.f32.mrf.mxu0 }
  0x95   :  { %v103_v18 = vadd.f32 %v420_v15, %v102_v17 }
  0x97   :  { %v106_v20 = vmax.f32 %v103_v18, 0.0 }
  0x99   :  { %v107_v21 = vpack.c.bf16 %v106_v20, %v105_v19 }
  0x9b   :  { %184 = vmatmul.bf16.vlgmr.msra.gmra.mxu1 %v107_v21 }
 0x118   :  { %v185_v26 = vpop.f32.mrf.mxu1 }
 0x119   :  { %v186_v28 = vadd.f32 %v421_v27, %v185_v26 }
 0x11b   :  { %v190_v31 = vmax.f32 %v186_v28, 0.0 }
 0x120   :  { %v187_v29 = vpop.f32.mrf.mxu1 }
 0x121   :  { %v188_v30 = vadd.f32 %v421_v27, %v187_v29 }
 0x123   :  { %v191_v32 = vmax.f32 %v188_v30, 0.0 }
 0x125   :  { %v192_v33 = vpack.c.bf16 %v191_v32, %v190_v31 }
 0x127   :  { %269 = vmatmul.bf16.vlgmr.msra.gmra.mxu2 %v192_v33 }
 0x1aa   :  { %v270_v36 = vpop.f32.mrf.mxu2 }
 0x1ab   :  { %v271_v37 = vadd.f32 %v422_v34, %v270_v36 }
 0x1ad   :  { %v279_v38 = vadd.f32 %v424_v35, %v271_v37 }
 0x1af   :  { %281 = vmax.xlane.f32.xlu0 %v279_v38 }
 0x1b2   :  { %v272_v39 = vpop.f32.mrf.mxu2 }
 0x1b3   :  { %v273_v40 = vadd.f32 %v422_v34, %v272_v39 }
 0x1b5   :  { %v280_v41 = vadd.f32 %v424_v35, %v273_v40 }
 0x1b7   :  { %283 = vmax.xlane.f32.xlu0 %v280_v41 }
 0x222   :  { %v282_v42 = vpop.xlane.xlu0 %281 }
 0x223   :  { %v285_v43 = vsub.f32 %v279_v38, %v282_v42 }
 0x225   :  { %v287_v44 = vmul.f32 1.442695, %v285_v43 }
 0x227   :  { %426 = vpow2.f32 %v287_v44 }
 0x22a   :  { %v284_v45 = vpop.xlane.xlu0 %283 }
 0x22b   :  { %v286_v46 = vsub.f32 %v280_v41, %v284_v45 }
 0x22d   :  { %v427_v47 = vpop.eup %426  ;;  %v289_v48 = vmul.f32 1.442695, %v286_v46 }
 0x22e   :  { %291 = vadd.xlane.f32.xlu1 %v427_v47 }
 0x22f   :  { %428 = vpow2.f32 %v289_v48 }
 0x235   :  { %v429_v49 = vpop.eup %428 }
 0x236   :  { %293 = vadd.xlane.f32.xlu1 %v429_v49 }
 0x2a1   :  { %v292_v50 = vpop.xlane.xlu1 %291 }
 0x2a2   :  { %430 = vlog2.f32 %v292_v50 }
 0x2a3   :  { %432 = vtanh.f32 %v271_v37 }
 0x2a8   :  { %v431_v51 = vpop.eup %430 }
 0x2a9   :  { %v296_v54 = vmul.f32 0.6931472, %v431_v51  ;;  %v294_v55 = vpop.xlane.xlu1 %293  ;;  %v433_v56 = vpop.eup %432 }
 0x2aa   :  { %434 = vlog2.f32 %v294_v55  ;;  %v313_v58 = vmul.f32 %v433_v56, %v423_v52 }
 0x2ab   :  { %v299_v57 = vsub.f32 %v285_v43, %v296_v54  ;;  %436 = vtanh.f32 %v273_v40 }
 0x2ad   :  { %v307_v59 = vmul.f32 %v425_v53, %v299_v57 }
 0x2af   :  { %v315_v60 = vadd.f32 %v313_v58, %v307_v59 }
 0x2b0   :  { %v435_v61 = vpop.eup %434 }
 0x2b1   :  { %317 = vst [vmem:[%s595_s10] sm:$0xff] %v315_v60  ;;  %v298_v62 = vmul.f32 0.6931472, %v435_v61  ;;  %v437_v63 = vpop.eup %436 }
 0x2b2   :  { %v314_v1 = vmul.f32 %v437_v63, %v423_v52 }
 0x2b3   :  { %v300_v0 = vsub.f32 %v286_v46, %v298_v62 }
 0x2b5   :  { %v308_v2 = vmul.f32 %v425_v53, %v300_v0 }
 0x2b7   :  { %v316_v3 = vadd.f32 %v314_v1, %v308_v2 }
 0x2b9   :  { %318 = vst [vmem:[%s595_s10 + $0x8] sm:$0xff] %v316_v3 }
 0x2ba   :  { %323 = vsyncpa [#allocation3], 1 }
 0x2bb   :  { %324 = vsyncpa [#allocation5], 1 }

</bundles_post_ra>
